<compile_context>
chip_gen: v7x
topology: tpu7x:2x2x1
jax: 0.10.0
libtpu: 0.0.40
codegen_flags: <defaults>
</compile_context>

<pallas_src>
import jax
import jax.numpy as jnp
from jax.experimental import pallas as pl
from jax.experimental.pallas import tpu as pltpu


def _round_up(x, m):
    return ((x + m - 1) // m) * m


# ---------------------------------------------------------------------------
# Kernels
# ---------------------------------------------------------------------------
def _ffn_kernel_fused(x_ref, w1_ref, b1_ref, w2_ref, b2_ref, o_ref):
    """Single-pass FFN tile (no reduction axis, no accumulator RMW).

    Grid: (row tile i, output-column tile n).
    x_ref : (tm, Hp) input rows, original dtype (cast per tile)
    w1_ref: (Hp, Ip) full W1 (resident, bf16)
    b1_ref: (1, Ip)  b1 (f32)
    w2_ref: (Ip, tn) W2 column tile (bf16)
    b2_ref: (1, tn)  b2 tile (f32)
    o_ref : (tm, tn) output tile
    """
    xt = x_ref[...].astype(w1_ref.dtype)            # per-tile cast (VPU)
    h = jnp.dot(xt, w1_ref[...], preferred_element_type=jnp.float32)
    h = jnp.maximum(h + b1_ref[...], 0.0)
    # TODO(synk): dropout is identity (inference mode); training-mode dropout
    # would use pltpu.prng_seed / pltpu.prng_random_bits.
    y = jnp.dot(h.astype(w2_ref.dtype), w2_ref[...],
                preferred_element_type=jnp.float32)
    o_ref[...] = (y + b2_ref[...]).astype(o_ref.dtype)


def _ffn_kernel_acc(x_ref, w1_ref, b1_ref, w2_ref, b2_ref, o_ref, acc_ref):
    """FFN tile with reduction over intermediate tiles (axis k is LAST).

    Grid: (row tile i, output-column tile n, intermediate tile k).
    acc_ref: (tm, tn) f32 accumulator scratch.
    """
    k = pl.program_id(2)

    @pl.when(k == 0)
    def _init():
        acc_ref[...] = jnp.zeros_like(acc_ref)

    xt = x_ref[...].astype(w1_ref.dtype)
    h = jnp.dot(xt, w1_ref[...], preferred_element_type=jnp.float32)
    h = jnp.maximum(h + b1_ref[...], 0.0)
    acc_ref[...] += jnp.dot(h.astype(w2_ref.dtype), w2_ref[...],
                            preferred_element_type=jnp.float32)

    @pl.when(k == pl.num_programs(2) - 1)
    def _finalize():
        # b2 added exactly once, in the finalize branch.
        o_ref[...] = (acc_ref[...] + b2_ref[...]).astype(o_ref.dtype)


# ---------------------------------------------------------------------------
# Generation-aware VMEM budgeting & tile selection
# ---------------------------------------------------------------------------
def _vmem_budget():
    """Returns (tile working-set budget, vmem_limit_bytes cap).

    128-MiB chips (v5e / v6e): big budget so tm can reach 512 (halves weight
    re-streaming).  64-MiB-per-TC chips (v7x) or unknown: conservative budget
    and never request the full physical VMEM (compiler needs headroom).
    """
    cap = 64 << 20
    try:
        cap = int(getattr(pltpu.get_tpu_info(), "vmem_capacity_bytes", cap))
    except Exception:
        pass
    if cap >= (96 << 20):
        return 96 << 20, 112 << 20
    return 44 << 20, 56 << 20


def _pick_tiles(M, Hp, Ip, xbytes, cbytes, obytes, budget):
    """Pick (tm, tn, ti) under the VMEM budget.

    Preference: (1) a single reduction step (ti == Ip, drops the accumulator)
    with a decent row tile; (2) otherwise full-width output tile (no W1
    re-streaming), then the largest row tile (fewest weight re-streams), then
    the largest intermediate tile (fewest k steps); (3) tiny row tiles only as
    a last resort.  ti/tn are 256-aligned where possible, tm a multiple of 16.
    """
    tm_cap = 512 if budget > (48 << 20) else 256
    tm_top = min(tm_cap, max(16, _round_up(M, 16)))
    tm_cands = [t for t in (512, 256, 128, 64, 32, 16) if t <= tm_top]
    if not tm_cands:
        tm_cands = [tm_top]

    def _cands(total, extra):
        out = []
        for c in (total,) + extra:
            if c <= total and total % c == 0 and c not in out:
                out.append(c)
        return out or [total]

    ti_cands = _cands(Ip, (512, 256, 128))
    tn_cands = _cands(Hp, (2048, 1024, 512, 256, 128))

    def est(tm_, tn_, ti_):
        ktrips = Ip // ti_
        ins = 2 * (tm_ * Hp * xbytes                    # x tile (double-buffered)
                   + (Hp * ti_ + ti_ * tn_) * cbytes    # W1, W2 tiles
                   + (ti_ + tn_) * 4)                   # b1, b2 tiles
        outs = 2 * tm_ * tn_ * obytes                   # output tile
        acc = tm_ * tn_ * 4 if ktrips > 1 else 0        # f32 accumulator
        return ins + outs + acc

    def _search(ti_list, tm_floor):
        for tn in tn_cands:
            for tm in tm_cands:
                if tm < tm_floor:
                    continue
                for ti in ti_list:
                    e = est(tm, tn, ti)
                    if e <= budget:
                        return tm, tn, ti, e
        return None

    tm_floor0 = min(128, tm_top)
    for ti_list, tm_floor in (([ti_cands[0]], tm_floor0),   # single-k preferred
                              (ti_cands, tm_floor0),        # general
                              (ti_cands, 16)):              # last resort
        got = _search(ti_list, tm_floor)
        if got is not None:
            return got
    tm, tn, ti = tm_cands[-1], tn_cands[-1], ti_cands[-1]
    return tm, tn, ti, est(tm, tn, ti)


# ---------------------------------------------------------------------------
# Wrapper
# ---------------------------------------------------------------------------
def prepare_ffn_params(w1, b1, w2, b2, *, compute_dtype=jnp.bfloat16):
    """Pad weights to lane-dense 128-multiples and cast to bf16 ONCE.

    Call once and reuse across feed_forward calls so the per-call path never
    re-reads / rewrites the weight matrices in HBM.  Padding is skipped when
    the dims are already 128-multiples.
    """
    # w1: (hidden, intermediate) == PyTorch w_1.weight.T ; w2: (inter, hidden)
    H, I = w1.shape
    Hp, Ip = _round_up(H, 128), _round_up(I, 128)
    w1p = w1.astype(compute_dtype)
    w2p = w2.astype(compute_dtype)
    b1p = b1.astype(jnp.float32)
    b2p = b2.astype(jnp.float32)
    if (Hp, Ip) != (H, I):
        w1p = jnp.pad(w1p, ((0, Hp - H), (0, Ip - I)))
        w2p = jnp.pad(w2p, ((0, Ip - I), (0, Hp - H)))
        b1p = jnp.pad(b1p, (0, Ip - I))
        b2p = jnp.pad(b2p, (0, Hp - H))
    # TODO(synk): optional fp8 weight path (per-channel scales) on v7x.
    return dict(w1=w1p, b1=b1p.reshape(1, Ip), w2=w2p, b2=b2p.reshape(1, Hp),
                H=H, I=I, compute_dtype=compute_dtype)


def feed_forward(x, params):
    """Position-wise FFN: relu(x @ W1 + b1) @ W2 + b2 (dropout = identity).

    x: (batch, seq, hidden), any float dtype; params from prepare_ffn_params.
    """
    B, S, H = x.shape
    assert H == params["H"], "hidden size mismatch with prepared params"
    compute_dtype = params["compute_dtype"]
    w1p, b1p, w2p, b2p = params["w1"], params["b1"], params["w2"], params["b2"]
    Hp, Ip = w1p.shape
    out_dtype = x.dtype
    M = B * S

    xbytes = jnp.dtype(x.dtype).itemsize
    cbytes = jnp.dtype(compute_dtype).itemsize
    obytes = jnp.dtype(out_dtype).itemsize
    budget, limit_cap = _vmem_budget()
    tm, tn, ti, vmem_est = _pick_tiles(M, Hp, Ip, xbytes, cbytes, obytes, budget)
    Mp = _round_up(M, tm)

    # x stays in its original dtype (cast per tile inside the kernel); pad
    # only when the shapes actually need it.
    x2d = x.reshape(M, H)
    needs_pad = (Mp, Hp) != (M, H)
    if needs_pad:
        x2d = jnp.pad(x2d, ((0, Mp - M), (0, Hp - H)))

    vmem_limit = int(min(max(vmem_est + (8 << 20), 32 << 20), limit_cap))
    ktrips = Ip // ti
    grid_rows, grid_cols = Mp // tm, Hp // tn
    # Note: when grid_rows == 1 (small M / decode), the output-column axis
    # still provides parallel work for megacore chips if grid_cols > 1.

    if ktrips == 1:
        # Single fused pass: no reduction axis, no accumulator scratch.
        grid = (grid_rows, grid_cols)
        in_specs = [
            pl.BlockSpec((tm, Hp), lambda i, n: (i, 0)),   # x rows
            pl.BlockSpec((Hp, Ip), lambda i, n: (0, 0)),   # W1 (resident)
            pl.BlockSpec((1, Ip),  lambda i, n: (0, 0)),   # b1
            pl.BlockSpec((Ip, tn), lambda i, n: (0, n)),   # W2 column tile
            pl.BlockSpec((1, tn),  lambda i, n: (0, n)),   # b2 tile
        ]
        out_specs = pl.BlockSpec((tm, tn), lambda i, n: (i, n))
        scratch_shapes = ()
        kernel = _ffn_kernel_fused
        dim_sem = ("parallel", "parallel")
    else:
        # Reduction over intermediate tiles; reduction axis LAST in the grid.
        grid = (grid_rows, grid_cols, ktrips)
        in_specs = [
            pl.BlockSpec((tm, Hp), lambda i, n, k: (i, 0)),   # x rows
            pl.BlockSpec((Hp, ti), lambda i, n, k: (0, k)),   # W1 column tile
            pl.BlockSpec((1, ti),  lambda i, n, k: (0, k)),   # b1 tile
            pl.BlockSpec((ti, tn), lambda i, n, k: (k, n)),   # W2 tile
            pl.BlockSpec((1, tn),  lambda i, n, k: (0, n)),   # b2 tile
        ]
        out_specs = pl.BlockSpec((tm, tn), lambda i, n, k: (i, n))
        scratch_shapes = (pltpu.VMEM((tm, tn), jnp.float32),)
        kernel = _ffn_kernel_acc
        dim_sem = ("parallel", "parallel", "arbitrary")

    out = pl.pallas_call(
        kernel,
        out_shape=jax.ShapeDtypeStruct((Mp, Hp), out_dtype),
        grid_spec=pltpu.PrefetchScalarGridSpec(
            num_scalar_prefetch=0,
            grid=grid,
            in_specs=in_specs,
            out_specs=out_specs,
            scratch_shapes=scratch_shapes,
        ),
        compiler_params=pltpu.CompilerParams(
            dimension_semantics=dim_sem,
            vmem_limit_bytes=vmem_limit,
        ),
    )(x2d, w1p, b1p, w2p, b2p)

    if needs_pad:
        out = out[:M, :H]
    return out.reshape(B, S, H)


def xavier_uniform(key, shape, dtype=jnp.float32):
    """Matches torch.nn.init.xavier_uniform_ (symmetric bound, layout-free)."""
    fan_in, fan_out = shape
    bound = (6.0 / (fan_in + fan_out)) ** 0.5
    return jax.random.uniform(key, shape, dtype, minval=-bound, maxval=bound)


if __name__ == "__main__":
    # Small config consistent with the module: hidden=32, intermediate=64.
    batch, seq, hidden, inter = 2, 8, 32, 64

    key = jax.random.PRNGKey(0)
    kx, k1, k2 = jax.random.split(key, 3)

    x = jax.random.normal(kx, (batch, seq, hidden), dtype=jnp.float32)
    # Weights stored as (in_features, out_features) == PyTorch weight.T
    w1 = xavier_uniform(k1, (hidden, inter))
    b1 = jnp.zeros((inter,), jnp.float32)
    w2 = xavier_uniform(k2, (inter, hidden))
    b2 = jnp.zeros((hidden,), jnp.float32)

    # Prepare (pad + cast) the weights once; reuse across calls.
    params = prepare_ffn_params(w1, b1, w2, b2)

    y = feed_forward(x, params)
    y = jax.block_until_ready(y)

    # Reference in plain f32 JAX. Kernel multiplies in bf16 with f32
    # accumulation, so compare with a correspondingly loose tolerance.
    ref = jnp.maximum(x @ w1 + b1, 0.0) @ w2 + b2
    assert y.shape == (batch, seq, hidden)
    assert jnp.allclose(y, ref, atol=5e-2, rtol=5e-2), float(
        jnp.max(jnp.abs(y - ref)))

    print("KERNEL_OK")
</pallas_src>

<mosaic_0001>
module attributes {stable_mosaic.version = 11 : i64} {
  func.func @_ffn_kernel_fused(%arg0: i32, %arg1: i32, %arg2: memref<16x128xf32, #tpu.memory_space<vmem>>, %arg3: memref<128x128xbf16, #tpu.memory_space<vmem>>, %arg4: memref<1x128xf32, #tpu.memory_space<vmem>>, %arg5: memref<128x128xbf16, #tpu.memory_space<vmem>>, %arg6: memref<1x128xf32, #tpu.memory_space<vmem>>, %arg7: memref<16x128xf32, #tpu.memory_space<vmem>>) attributes {dimension_semantics = [#tpu.dimension_semantics<parallel>, #tpu.dimension_semantics<parallel>], iteration_bounds = array<i64: 1, 1>, scalar_prefetch = 0 : i64, scratch_operands = 0 : i64, tpu.core_type = #tpu.core_type<tc>, window_params = [{transform_indices = @transform_0, window_bounds = array<i64: 16, 128>}, {pipeline_mode = #tpu.pipeline_mode<synchronous>, transform_indices = @transform_1, window_bounds = array<i64: 128, 128>}, {pipeline_mode = #tpu.pipeline_mode<synchronous>, transform_indices = @transform_2, window_bounds = array<i64: 1, 128>}, {transform_indices = @transform_3, window_bounds = array<i64: 128, 128>}, {transform_indices = @transform_4, window_bounds = array<i64: 1, 128>}, {transform_indices = @transform_5, window_bounds = array<i64: 16, 128>}]} {
    %c0 = arith.constant 0 : index
    %c0_0 = arith.constant 0 : index
    %0 = vector.load %arg2[%c0, %c0_0] : memref<16x128xf32, #tpu.memory_space<vmem>>, vector<16x128xf32>
    %1 = arith.truncf %0 : vector<16x128xf32> to vector<16x128xbf16>
    %c0_1 = arith.constant 0 : index
    %c0_2 = arith.constant 0 : index
    %2 = vector.load %arg3[%c0_1, %c0_2] : memref<128x128xbf16, #tpu.memory_space<vmem>>, vector<128x128xbf16>
    %cst = arith.constant dense<0.000000e+00> : vector<16x128xf32>
    %3 = tpu.matmul %1, %2, %cst {dimension_numbers = #tpu.dot_dimension_numbers<[1], [0], [0], [1], [0, 0, 1, 1], [], []>} : vector<16x128xbf16>, vector<128x128xbf16>, vector<16x128xf32> -> vector<16x128xf32>
    %c0_3 = arith.constant 0 : index
    %c0_4 = arith.constant 0 : index
    %4 = vector.load %arg4[%c0_3, %c0_4] : memref<1x128xf32, #tpu.memory_space<vmem>>, vector<1x128xf32>
    %5 = vector.broadcast %4 : vector<1x128xf32> to vector<16x128xf32>
    %6 = arith.addf %3, %5 : vector<16x128xf32>
    %cst_5 = arith.constant 0.000000e+00 : f32
    %7 = vector.broadcast %cst_5 : f32 to vector<16x128xf32>
    %8 = arith.maximumf %6, %7 : vector<16x128xf32>
    %9 = arith.truncf %8 : vector<16x128xf32> to vector<16x128xbf16>
    %c0_6 = arith.constant 0 : index
    %c0_7 = arith.constant 0 : index
    %10 = vector.load %arg5[%c0_6, %c0_7] : memref<128x128xbf16, #tpu.memory_space<vmem>>, vector<128x128xbf16>
    %cst_8 = arith.constant dense<0.000000e+00> : vector<16x128xf32>
    %11 = tpu.matmul %9, %10, %cst_8 {dimension_numbers = #tpu.dot_dimension_numbers<[1], [0], [0], [1], [0, 0, 1, 1], [], []>} : vector<16x128xbf16>, vector<128x128xbf16>, vector<16x128xf32> -> vector<16x128xf32>
    %c0_9 = arith.constant 0 : index
    %c0_10 = arith.constant 0 : index
    %12 = vector.load %arg6[%c0_9, %c0_10] : memref<1x128xf32, #tpu.memory_space<vmem>>, vector<1x128xf32>
    %13 = vector.broadcast %12 : vector<1x128xf32> to vector<16x128xf32>
    %14 = arith.addf %11, %13 : vector<16x128xf32>
    %c0_11 = arith.constant 0 : index
    %c0_12 = arith.constant 0 : index
    %15 = vector.load %arg7[%c0_11, %c0_12] : memref<16x128xf32, #tpu.memory_space<vmem>>, vector<16x128xf32>
    tpu.vector_store %arg7[%c0_11, %c0_12], %14 {strides = array<i32>} : memref<16x128xf32, #tpu.memory_space<vmem>>, vector<16x128xf32>,
    return
  }
  func.func @transform_0(%arg0: i32, %arg1: i32) -> (i32, i32) {
    %c0_i32 = arith.constant 0 : i32
    %c0_i32_0 = arith.constant 0 : i32
    return %arg0, %c0_i32 : i32, i32
  }
  func.func @transform_1(%arg0: i32, %arg1: i32) -> (i32, i32) {
    %c0_i32 = arith.constant 0 : i32
    %c0_i32_0 = arith.constant 0 : i32
    %c0_i32_1 = arith.constant 0 : i32
    return %c0_i32, %c0_i32_0 : i32, i32
  }
  func.func @transform_2(%arg0: i32, %arg1: i32) -> (i32, i32) {
    %c0_i32 = arith.constant 0 : i32
    %c0_i32_0 = arith.constant 0 : i32
    %c0_i32_1 = arith.constant 0 : i32
    return %c0_i32, %c0_i32_0 : i32, i32
  }
  func.func @transform_3(%arg0: i32, %arg1: i32) -> (i32, i32) {
    %c0_i32 = arith.constant 0 : i32
    %c0_i32_0 = arith.constant 0 : i32
    return %c0_i32, %arg1 : i32, i32
  }
  func.func @transform_4(%arg0: i32, %arg1: i32) -> (i32, i32) {
    %c0_i32 = arith.constant 0 : i32
    %c0_i32_0 = arith.constant 0 : i32
    return %c0_i32, %arg1 : i32, i32
  }
  func.func @transform_5(%arg0: i32, %arg1: i32) -> (i32, i32) {
    %c0_i32 = arith.constant 0 : i32
    return %arg0, %arg1 : i32, i32
  }
}

</mosaic_0001>

<bundles_post_ra>
// kernel: tpu_custom_call.1
= control target key start
LH: loop header
LB: loop body
LE: loop exit
PB: predicated region body
PF: predicated region fallthrough
CT: control target
= control target key end

     0   :  { %10 = vsyncpa [#allocation3], 0  ;;  %s615_s0 = inlined_call_operand.hbm [shape: f32[16,128], index: 0, kind: input, shape index: {}]   ;;  %s616_s1 = inlined_call_operand.hbm [shape: bf16[128,128], index: 1, kind: input, shape index: {}]   ;;  %s617_s2 = inlined_call_operand.vmem [shape: f32[1,128], index: 2, kind: input, shape index: {}]   ;;  %s618_s3 = inlined_call_operand.hbm [shape: bf16[128,128], index: 3, kind: input, shape index: {}]   ;;  %s619_s4 = inlined_call_operand.vmem [shape: f32[1,128], index: 4, kind: input, shape index: {}]   ;;  %s620_s5 = inlined_call_operand.hbm [shape: f32[16,128], index: 5, kind: output, shape index: {}]  }
   0x1   :  { %11 = vsyncpa [#allocation6], 0 }
   0x2   :  { %12 = vsyncpa [#allocation4], 0  ;;  %s509_s18 = smov [#allocation5]   ;;  %s415_s22 = scalar_lea.hbm %s616_s1, 1024 }
   0x3   :  { %s30_s19 = sshll.u32 %s509_s18, 4  ;;  %p416_p0 = scmp.ne.s32.totalorder %s616_s1, %s415_s22  ;;  %s31_s19 = int_to_ptr.vmem [resolvable:$true] %s30_s19 }
   0x4   :  { %p419_p1 = scmp.lt.u32.totalorder %s415_s22, %s616_s1 }
   0x6   :  { %p421_p2 = pnand %p419_p1, %p416_p0 }
   0x8   :  { %424 = shalt.err (!%p421_p2)
}
   0x9   :  { %s425_s27 = scalar_lea.vmem %s31_s19, 1024  ;;  %p430_p4 = scmp.lt.s32.totalorder %s31_s19, %s31_s19 }
   0xa   :  { %p426_p3 = scmp.ne.s32.totalorder %s31_s19, %s425_s27  ;;  %p431_p5 = scmp.lt.s32.totalorder %s425_s27, %s425_s27 }
   0xc   :  { %p432_p6 = por %p431_p5, %p430_p4 }
   0xe   :  { %p433_p7 = pnand %p432_p6, %p426_p3 }
  0x10   :  { %436 = shalt.err (!%p433_p7)
}
  0x11   :  { %s510_s28 = smov 64   ;;  %s511_s29 = smov 4  }
  0x12   :  { %36 = dma.hbm_to_vmem [thread:$0]  %s616_s1, 1024, %s31_s19, [#allocation6], %s510_s28, %s510_s28, %s511_s29  }
  0x13   :  { %s512_s7 = smov [#allocation2]   ;;  %s437_s11 = scalar_lea.hbm %s615_s0, 256 }
  0x14   :  { %s18_s8 = sshll.u32 %s512_s7, 4  ;;  %p438_p8 = scmp.ne.s32.totalorder %s615_s0, %s437_s11  ;;  %s19_s8 = int_to_ptr.vmem [resolvable:$true] %s18_s8 }
  0x15   :  { %p441_p9 = scmp.lt.u32.totalorder %s437_s11, %s615_s0 }
  0x17   :  { %p443_p10 = pnand %p441_p9, %p438_p8 }
  0x19   :  { %446 = shalt.err (!%p443_p10)
}
  0x1a   :  { %s447_s16 = scalar_lea.vmem %s19_s8, 256  ;;  %p452_p12 = scmp.lt.s32.totalorder %s19_s8, %s19_s8 }
  0x1b   :  { %p448_p11 = scmp.ne.s32.totalorder %s19_s8, %s447_s16  ;;  %p453_p13 = scmp.lt.s32.totalorder %s447_s16, %s447_s16 }
  0x1d   :  { %p454_p0 = por %p453_p13, %p452_p12 }
  0x1f   :  { %p455_p1 = pnand %p454_p0, %p448_p11 }
  0x21   :  { %458 = shalt.err (!%p455_p1)
}
  0x22   :  { %s513_s1 = smov 128   ;;  %s514_s17 = smov 8  }
  0x23   :  { %24 = dma.hbm_to_vmem [thread:$0]  %s615_s0, 256, %s19_s8, [#allocation3], %s513_s1, %s513_s1, %s514_s17  }
  0x24   :  { %s515_s20 = smov [#allocation7]   ;;  %s459_s24 = scalar_lea.hbm %s618_s3, 1024 }
  0x25   :  { %s44_s21 = sshll.u32 %s515_s20, 4  ;;  %p460_p2 = scmp.ne.s32.totalorder %s618_s3, %s459_s24  ;;  %s45_s21 = int_to_ptr.vmem [resolvable:$true] %s44_s21 }
  0x26   :  { %p463_p3 = scmp.lt.u32.totalorder %s459_s24, %s618_s3 }
  0x28   :  { %p465_p4 = pnand %p463_p3, %p460_p2 }
  0x2a   :  { %468 = shalt.err (!%p465_p4)
}
  0x2b   :  { %s469_s6 = scalar_lea.vmem %s45_s21, 1024  ;;  %p474_p6 = scmp.lt.s32.totalorder %s45_s21, %s45_s21 }
  0x2c   :  { %p470_p5 = scmp.ne.s32.totalorder %s45_s21, %s469_s6  ;;  %p475_p7 = scmp.lt.s32.totalorder %s469_s6, %s469_s6 }
  0x2e   :  { %p476_p8 = por %p475_p7, %p474_p6 }
  0x30   :  { %p477_p9 = pnand %p476_p8, %p470_p5 }
  0x32   :  { %480 = shalt.err (!%p477_p9)
}
  0x33   :  { %50 = dma.hbm_to_vmem [thread:$0]  %s618_s3, 1024, %s45_s21, [#allocation6], %s510_s28, %s510_s28, %s511_s29  }
  0x34   :  { %503 = dma.done.wait [#allocation3], 256  }
  0x35   :  { %504 = vsyncadd [#allocation3], 4294967040 }
  0x36   :  { %505 = dma.done.wait [#allocation6], 2048  }
  0x37   :  { %506 = vsyncadd [#allocation6], 4294965248  ;;  %v516_v0 = vmov 0.0   ;;  %vm517_vm0 = vmmov 0   ;;  %v399_v1 = vld [vmem:[#allocation5] sm:$0xff]   ;;  %v400_v2 = vld [vmem:[#allocation5 + $0x8] sm:$0xff]  }
  0x38   :  { %349 = vmatprep.subr.bf16.mxu0 %v516_v0  ;;  %365 = vmatprep.mubr.msk.bf16.mxu0 %vm517_vm0, %v516_v0  ;;  %v401_v3 = vld [vmem:[#allocation5 + $0x10] sm:$0xff]   ;;  %v407_v4 = vld [vmem:[#allocation7] sm:$0xff]   ;;  %v402_v5 = vld [vmem:[#allocation5 + $0x18] sm:$0xff]   ;;  %s518_s9 = smov [#allocation8]  }
  0x39   :  { %369 = vmatprep.subr.bf16.mxu1 %v516_v0  ;;  %385 = vmatprep.mubr.msk.bf16.mxu1 %vm517_vm0, %v516_v0  ;;  %v408_v6 = vld [vmem:[#allocation7 + $0x8] sm:$0xff]   ;;  %v403_v7 = vld [vmem:[#allocation5 + $0x20] sm:$0xff]   ;;  %v409_v8 = vld [vmem:[#allocation7 + $0x10] sm:$0xff]   ;;  %s300_s10 = sshll.u32 %s518_s9, 4  ;;  %s301_s10 = int_to_ptr.vmem [resolvable:$true] %s300_s10 }
  0x3a   :  { %350 = vmatpush3.bf16.msra.mxu0 %v399_v1  ;;  %370 = vmatpush3.bf16.msra.mxu1 %v407_v4  ;;  %v404_v9 = vld [vmem:[#allocation5 + $0x28] sm:$0xff]   ;;  %v410_v10 = vld [vmem:[#allocation7 + $0x18] sm:$0xff]   ;;  %v405_v11 = vld [vmem:[#allocation5 + $0x30] sm:$0xff]   ;;  %p486_p11 = scmp.lt.s32.totalorder %s301_s10, %s301_s10 }
  0x3b   :  { %351 = vmatprep.subr.bf16.mxu0 %v516_v0  ;;  %371 = vmatprep.subr.bf16.mxu1 %v516_v0  ;;  %v411_v12 = vld [vmem:[#allocation7 + $0x20] sm:$0xff]   ;;  %v406_v13 = vld [vmem:[#allocation5 + $0x38] sm:$0xff]   ;;  %v63_v14 = vld [vmem:[#allocation2] sm:$0xff] }
  0x3c   :  { %v64_v15 = vld [vmem:[#allocation2 + $0x8] sm:$0xff]  ;;  %v412_v16 = vld [vmem:[#allocation7 + $0x28] sm:$0xff]   ;;  %v413_v18 = vld [vmem:[#allocation7 + $0x30] sm:$0xff]  }
  0x3d   :  { %v65_v17 = vpack.c.bf16 %v64_v15, %v63_v14  ;;  %v414_v19 = vld [vmem:[#allocation7 + $0x38] sm:$0xff]   ;;  %v313_v20 = vld [vmem:[%s617_s2] ss:$0 sm:$0xff]  ;;  %s481_s2 = scalar_lea.vmem %s301_s10, 256 }
  0x3e   :  { %352 = vmatpush3.bf16.msra.mxu0 %v400_v2  ;;  %372 = vmatpush3.bf16.msra.mxu1 %v408_v6  ;;  %v322_v30 = vld [vmem:[%s619_s4] ss:$0 sm:$0xff]  ;;  %p482_p10 = scmp.ne.s32.totalorder %s301_s10, %s481_s2  ;;  %p487_p12 = scmp.lt.s32.totalorder %s481_s2, %s481_s2 }
  0x3f   :  { %353 = vmatprep.subr.bf16.mxu0 %v516_v0  ;;  %373 = vmatprep.subr.bf16.mxu1 %v516_v0 }
  0x40   :  { %p488_p13 = por %p487_p12, %p486_p11 }
  0x42   :  { %354 = vmatpush3.bf16.msra.mxu0 %v401_v3  ;;  %374 = vmatpush3.bf16.msra.mxu1 %v409_v8  ;;  %p489_p0 = pnand %p488_p13, %p482_p10 }
  0x43   :  { %355 = vmatprep.subr.bf16.mxu0 %v516_v0  ;;  %375 = vmatprep.subr.bf16.mxu1 %v516_v0 }
  0x46   :  { %356 = vmatpush3.bf16.msra.mxu0 %v402_v5  ;;  %376 = vmatpush3.bf16.msra.mxu1 %v410_v10 }
  0x47   :  { %357 = vmatprep.subr.bf16.mxu0 %v516_v0  ;;  %377 = vmatprep.subr.bf16.mxu1 %v516_v0 }
  0x4a   :  { %358 = vmatpush3.bf16.msra.mxu0 %v403_v7  ;;  %378 = vmatpush3.bf16.msra.mxu1 %v411_v12 }
  0x4b   :  { %359 = vmatprep.subr.bf16.mxu0 %v516_v0  ;;  %379 = vmatprep.subr.bf16.mxu1 %v516_v0 }
  0x4e   :  { %360 = vmatpush3.bf16.msra.mxu0 %v404_v9  ;;  %380 = vmatpush3.bf16.msra.mxu1 %v412_v16 }
  0x4f   :  { %361 = vmatprep.subr.bf16.mxu0 %v516_v0  ;;  %381 = vmatprep.subr.bf16.mxu1 %v516_v0 }
  0x52   :  { %362 = vmatpush3.bf16.msra.mxu0 %v405_v11  ;;  %382 = vmatpush3.bf16.msra.mxu1 %v413_v18 }
  0x53   :  { %363 = vmatprep.subr.bf16.mxu0 %v516_v0  ;;  %383 = vmatprep.subr.bf16.mxu1 %v516_v0 }
  0x56   :  { %364 = vmatpush3.bf16.msra.mxu0 %v406_v13  ;;  %384 = vmatpush3.bf16.msra.mxu1 %v414_v19 }
  0x59   :  { %366 = vmatmul.mubr.bf16.vlgmr.msra.gmra.mrb[0].mxu0 %v65_v17 }
 0x12c   :  { %v171_v21 = vpop.f32.mrb[0].mxu0 }
 0x12d   :  { %v172_v22 = vadd.f32 %v313_v20, %v171_v21  ;;  %v367_v23 = vpop.f32.mrb[1].mxu0 }
 0x12e   :  { %v174_v24 = vpop.f32.mrb[2].mxu0 }
 0x12f   :  { %v175_v25 = vadd.f32 %v313_v20, %v174_v24  ;;  %v368_v26 = vpop.f32.mrb[3].mxu0  ;;  %v178_v27 = vmax.f32 %v172_v22, 0.0 }
 0x131   :  { %v179_v28 = vmax.f32 %v175_v25, 0.0 }
 0x133   :  { %v180_v29 = vpack.c.bf16 %v179_v28, %v178_v27 }
 0x135   :  { %386 = vmatmul.mubr.bf16.vlgmr.msra.gmra.mrb[0].mxu1 %v180_v29 }
 0x208   :  { %v286_v31 = vpop.f32.mrb[0].mxu1 }
 0x209   :  { %v287_v32 = vadd.f32 %v322_v30, %v286_v31  ;;  %v387_v33 = vpop.f32.mrb[1].mxu1 }
 0x20a   :  { %v289_v34 = vpop.f32.mrb[2].mxu1 }
 0x20b   :  { %293 = vst [vmem:[#allocation8] sm:$0xff] %v287_v32  ;;  %v290_v35 = vadd.f32 %v322_v30, %v289_v34  ;;  %v388_v36 = vpop.f32.mrb[3].mxu1 }
 0x20d   :  { %294 = vst [vmem:[#allocation8 + $0x8] sm:$0xff] %v290_v35 }
 0x20e   :  { %492 = shalt.err (!%p489_p0)
}
 0x20f   :  { %s493_s12 = scalar_lea.hbm %s620_s5, 256 }
 0x210   :  { %p494_p1 = scmp.ne.s32.totalorder %s620_s5, %s493_s12  ;;  %p497_p2 = scmp.lt.u32.totalorder %s493_s12, %s620_s5 }
 0x212   :  { %p499_p3 = pnand %p497_p2, %p494_p1 }
 0x214   :  { %502 = shalt.err (!%p499_p3)
}
 0x215   :  { %306 = dma.vmem_to_hbm [thread:$0]  %s301_s10, 256, %s620_s5, [#allocation4], %s513_s1, %s513_s1, %s514_s17  }
 0x216   :  { %507 = dma.done.wait [#allocation4], 256  }
 0x217   :  { %508 = vsyncadd [#allocation4], 4294967040 }
 0x218   :  { %310 = vsyncpa [#allocation3], 1 }
 0x219   :  { %311 = vsyncpa [#allocation6], 1 }
 0x21a   :  { %312 = vsyncpa [#allocation4], 1 }

</bundles_post_ra>
